<compile_context>
chip_gen: v7x
topology: tpu7x:2x2x1
jax: 0.10.0
libtpu: 0.0.40
codegen_flags: <defaults>
</compile_context>

<pallas_src>
import functools

import jax
import jax.numpy as jnp
from jax.experimental import pallas as pl
from jax.experimental.pallas import tpu as pltpu

LANES = 128
SUBLANES = 8
MAX_TILE_ROWS_SUM = 4096    # 2 MiB/block f32; 2 inputs x 2 bufs = 8 MiB VMEM
MAX_TILE_ROWS_NONE = 2048   # 1 MiB/block f32; 3 streams x 2 bufs = 6 MiB VMEM


def _focal_weight(one_minus_pt, gamma):
    """(1 - pt) ** gamma, with a multiply chain for small integer gamma
    (jnp.power with a float exponent lowers to exp(gamma*log(x)): 2 extra EUP ops)."""
    g = float(gamma)
    if g == int(g) and 0 <= int(g) <= 4:
        gi = int(g)
        if gi == 0:
            return jnp.ones_like(one_minus_pt)
        r = one_minus_pt
        for _ in range(gi - 1):
            r = r * one_minus_pt
        return r
    return jnp.power(one_minus_pt, g)


def _focal_elementwise(x, t, alpha, gamma):
    # Numerically-stable binary_cross_entropy_with_logits (reduction='none'):
    #   bce = max(x, 0) - x*t + log1p(exp(-|x|))
    bce = jnp.maximum(x, 0.0) - x * t + jnp.log1p(jnp.exp(-jnp.abs(x)))
    pt = jnp.exp(-bce)
    return alpha * _focal_weight(1.0 - pt, gamma) * bce


def _focal_sum_kernel(x_ref, t_ref, out_ref, *, alpha, gamma, tile_rows,
                      full_rows, tail_cols, mask_last_block):
    """Reduce each (tile_rows, 128) block to (1, 128) and accumulate into the
    resident output block. Only the last block (if it can contain invalid
    elements) runs the mask code."""
    j = pl.program_id(0)

    @pl.when(j == 0)
    def _init():
        out_ref[...] = jnp.zeros_like(out_ref)

    x = x_ref[...].astype(jnp.float32)
    t = t_ref[...].astype(jnp.float32)
    f = _focal_elementwise(x, t, alpha, gamma)

    def _accumulate(v):
        out_ref[...] += jnp.sum(v, axis=0, keepdims=True)

    if mask_last_block:
        is_last = j == pl.num_programs(0) - 1

        @pl.when(jnp.logical_not(is_last))
        def _full():
            _accumulate(f)

        @pl.when(is_last)
        def _masked():
            row = (jax.lax.broadcasted_iota(jnp.int32, (tile_rows, LANES), 0)
                   + j * tile_rows)
            col = jax.lax.broadcasted_iota(jnp.int32, (tile_rows, LANES), 1)
            valid = (row < full_rows) | ((row == full_rows) & (col < tail_cols))
            # jnp.where selects (not a multiply), so garbage/NaN in OOB rows
            # of a partial final block is safe.
            _accumulate(jnp.where(valid, f, 0.0))
    else:
        _accumulate(f)


def _focal_none_kernel(x_ref, t_ref, o_ref, *, alpha, gamma):
    x = x_ref[...].astype(jnp.float32)
    t = t_ref[...].astype(jnp.float32)
    o_ref[...] = _focal_elementwise(x, t, alpha, gamma).astype(o_ref.dtype)


def focal_loss(inputs, targets, *, alpha=1.0, gamma=2.0, reduction="mean"):
    """Pallas-TPU focal loss. Scalar for 'mean'/'sum', elementwise for 'none'."""
    assert inputs.size == targets.size, (inputs.shape, targets.shape)
    x = inputs.reshape(-1)
    t = targets.reshape(-1)
    n = x.shape[0]
    alpha = float(alpha)
    gamma = float(gamma)

    if n == 0:
        if reduction == "none":
            return jnp.zeros(inputs.shape, inputs.dtype)
        if reduction == "sum":
            return jnp.zeros((), inputs.dtype)
        return jnp.full((), jnp.nan, inputs.dtype)  # mean of empty, like torch

    # Layout: zero-copy reshape when lane-aligned; otherwise pad only the
    # <128-element tail (the uncommon, ragged case).
    if n % LANES == 0:
        rows = n // LANES
        x2 = x.reshape(rows, LANES)          # free (contiguous reshape)
        t2 = t.reshape(rows, LANES)
        padded = False
    else:
        rows = pl.cdiv(n, LANES)
        pad = rows * LANES - n
        x2 = jnp.pad(x, (0, pad)).reshape(rows, LANES)
        t2 = jnp.pad(t, (0, pad)).reshape(rows, LANES)
        padded = True

    if reduction == "none":
        tile_rows = rows if rows <= MAX_TILE_ROWS_NONE else MAX_TILE_ROWS_NONE
        n_blocks = pl.cdiv(rows, tile_rows)
        spec = pl.BlockSpec((tile_rows, LANES), lambda i: (i, 0))
        out2d = pl.pallas_call(
            functools.partial(_focal_none_kernel, alpha=alpha, gamma=gamma),
            out_shape=jax.ShapeDtypeStruct((rows, LANES), inputs.dtype),
            grid=(n_blocks,),
            in_specs=[spec, spec],
            out_specs=spec,
            compiler_params=pltpu.CompilerParams(
                dimension_semantics=("parallel",),
                vmem_limit_bytes=32 * 1024 * 1024),
        )(x2, t2)
        if padded:
            return out2d.reshape(-1)[:n].reshape(inputs.shape)
        return out2d.reshape(inputs.shape)

    if reduction not in ("mean", "sum"):
        raise ValueError(f"unknown reduction: {reduction!r}")

    tile_rows = rows if rows <= MAX_TILE_ROWS_SUM else MAX_TILE_ROWS_SUM
    n_blocks = pl.cdiv(rows, tile_rows)
    full_rows = n // LANES            # fully-valid 128-wide rows
    tail_cols = n % LANES             # valid lanes in the row after them
    # Mask code is only emitted if the final block can see invalid data
    # (tail padding or partial-block OOB rows).
    mask_last_block = (n_blocks * tile_rows * LANES) > n

    kernel = functools.partial(
        _focal_sum_kernel, alpha=alpha, gamma=gamma, tile_rows=tile_rows,
        full_rows=full_rows, tail_cols=tail_cols,
        mask_last_block=mask_last_block)

    in_spec = pl.BlockSpec((tile_rows, LANES), lambda j: (j, 0))
    out_spec = pl.BlockSpec((1, LANES), lambda j: (0, 0))   # resident accumulator

    lane_sums = pl.pallas_call(
        kernel,
        out_shape=jax.ShapeDtypeStruct((1, LANES), jnp.float32),
        grid=(n_blocks,),
        in_specs=[in_spec, in_spec],
        out_specs=out_spec,
        compiler_params=pltpu.CompilerParams(
            dimension_semantics=("arbitrary",),
            vmem_limit_bytes=32 * 1024 * 1024),
    )(x2, t2)

    total = jnp.sum(lane_sums)        # tiny final 128-lane reduce in the wrapper
    if reduction == "mean":
        total = total / jnp.float32(n)
    return total.astype(inputs.dtype)


def _focal_loss_ref(inputs, targets, alpha=1.0, gamma=2.0, reduction="mean"):
    x = inputs.astype(jnp.float32)
    t = targets.astype(jnp.float32)
    bce = jnp.maximum(x, 0.0) - x * t + jnp.log1p(jnp.exp(-jnp.abs(x)))
    pt = jnp.exp(-bce)
    f = alpha * (1.0 - pt) ** gamma * bce
    if reduction == "mean":
        return f.mean()
    if reduction == "sum":
        return f.sum()
    return f


if __name__ == "__main__":
    key = jax.random.PRNGKey(0)
    k1, k2 = jax.random.split(key)

    # Small (N,) logits / {0,1} targets, consistent with the module's forward.
    for N in (2048,   # lane-aligned -> zero-copy fast path, no mask
              2000):  # ragged      -> padded-tail fallback + in-kernel mask
        logits = jax.random.normal(k1, (N,), dtype=jnp.float32) * 2.0
        labels = (jax.random.uniform(k2, (N,)) > 0.5).astype(jnp.float32)

        for red in ("mean", "sum"):
            got = jax.block_until_ready(
                focal_loss(logits, labels, alpha=1.0, gamma=2.0, reduction=red))
            ref = _focal_loss_ref(logits, labels, 1.0, 2.0, red)
            assert jnp.allclose(got, ref, rtol=1e-4, atol=1e-6), (N, red, got, ref)

        got_none = jax.block_until_ready(
            focal_loss(logits, labels, alpha=1.0, gamma=2.0, reduction="none"))
        ref_none = _focal_loss_ref(logits, labels, 1.0, 2.0, "none")
        assert jnp.allclose(got_none, ref_none, rtol=1e-5, atol=1e-6), (N,)

    print("KERNEL_OK")
</pallas_src>

<mosaic_0001>
module attributes {stable_mosaic.version = 11 : i64} {
  func.func @_focal_sum_kernel(%arg0: i32, %arg1: memref<16x128xf32, #tpu.memory_space<vmem>>, %arg2: memref<16x128xf32, #tpu.memory_space<vmem>>, %arg3: memref<1x128xf32, #tpu.memory_space<vmem>>) attributes {dimension_semantics = [#tpu.dimension_semantics<arbitrary>], iteration_bounds = array<i64: 1>, scalar_prefetch = 0 : i64, scratch_operands = 0 : i64, tpu.core_type = #tpu.core_type<tc>, window_params = [{transform_indices = @transform_0, window_bounds = array<i64: 16, 128>}, {transform_indices = @transform_1, window_bounds = array<i64: 16, 128>}, {pipeline_mode = #tpu.pipeline_mode<synchronous>, transform_indices = @transform_2, window_bounds = array<i64: 1, 128>}]} {
    %c0_i32 = arith.constant 0 : i32
    %0 = arith.cmpi eq, %arg0, %c0_i32 : i32
    %1 = arith.extui %0 : i1 to i32
    %c0_i32_0 = arith.constant 0 : i32
    %2 = arith.cmpi ne, %1, %c0_i32_0 : i32
    scf.if %2 {
      %cst_13 = arith.constant 0.000000e+00 : f32
      %29 = vector.broadcast %cst_13 : f32 to vector<1x128xf32>
      %c0_14 = arith.constant 0 : index
      %c0_15 = arith.constant 0 : index
      %30 = vector.load %arg3[%c0_14, %c0_15] : memref<1x128xf32, #tpu.memory_space<vmem>>, vector<1x128xf32>
      tpu.vector_store %arg3[%c0_14, %c0_15], %29 {strides = array<i32>} : memref<1x128xf32, #tpu.memory_space<vmem>>, vector<1x128xf32>,
    } else {
    }
    %c0 = arith.constant 0 : index
    %c0_1 = arith.constant 0 : index
    %3 = vector.load %arg1[%c0, %c0_1] : memref<16x128xf32, #tpu.memory_space<vmem>>, vector<16x128xf32>
    %c0_2 = arith.constant 0 : index
    %c0_3 = arith.constant 0 : index
    %4 = vector.load %arg2[%c0_2, %c0_3] : memref<16x128xf32, #tpu.memory_space<vmem>>, vector<16x128xf32>
    %cst = arith.constant 0.000000e+00 : f32
    %5 = vector.broadcast %cst : f32 to vector<16x128xf32>
    %6 = arith.maximumf %3, %5 : vector<16x128xf32>
    %7 = arith.mulf %3, %4 : vector<16x128xf32>
    %8 = arith.subf %6, %7 : vector<16x128xf32>
    %9 = math.absf %3 : vector<16x128xf32>
    %cst_4 = arith.constant 0.000000e+00 : f32
    %10 = vector.broadcast %cst_4 : f32 to vector<16x128xf32>
    %11 = arith.subf %10, %9 : vector<16x128xf32>
    %12 = math.exp %11 : vector<16x128xf32>
    %13 = math.log1p %12 : vector<16x128xf32>
    %14 = arith.addf %8, %13 : vector<16x128xf32>
    %cst_5 = arith.constant 0.000000e+00 : f32
    %15 = vector.broadcast %cst_5 : f32 to vector<16x128xf32>
    %16 = arith.subf %15, %14 : vector<16x128xf32>
    %17 = math.exp %16 : vector<16x128xf32>
    %cst_6 = arith.constant 1.000000e+00 : f32
    %18 = vector.broadcast %cst_6 : f32 to vector<16x128xf32>
    %19 = arith.subf %18, %17 : vector<16x128xf32>
    %20 = arith.mulf %19, %19 : vector<16x128xf32>
    %cst_7 = arith.constant 1.000000e+00 : f32
    %21 = vector.broadcast %cst_7 : f32 to vector<16x128xf32>
    %22 = arith.mulf %21, %20 : vector<16x128xf32>
    %23 = arith.mulf %22, %14 : vector<16x128xf32>
    %c0_8 = arith.constant 0 : index
    %c0_9 = arith.constant 0 : index
    %24 = vector.load %arg3[%c0_8, %c0_9] : memref<1x128xf32, #tpu.memory_space<vmem>>, vector<1x128xf32>
    %cst_10 = arith.constant dense<0.000000e+00> : vector<128xf32>
    %25 = vector.multi_reduction <add>, %23, %cst_10 [0] : vector<16x128xf32> to vector<128xf32>
    %26 = vector.shape_cast %25 : vector<128xf32> to vector<1x128xf32>
    %27 = arith.addf %24, %26 : vector<1x128xf32>
    %c0_11 = arith.constant 0 : index
    %c0_12 = arith.constant 0 : index
    %28 = vector.load %arg3[%c0_11, %c0_12] : memref<1x128xf32, #tpu.memory_space<vmem>>, vector<1x128xf32>
    tpu.vector_store %arg3[%c0_11, %c0_12], %27 {strides = array<i32>} : memref<1x128xf32, #tpu.memory_space<vmem>>, vector<1x128xf32>,
    return
  }
  func.func @transform_0(%arg0: i32) -> (i32, i32) {
    %c0_i32 = arith.constant 0 : i32
    %c0_i32_0 = arith.constant 0 : i32
    return %arg0, %c0_i32 : i32, i32
  }
  func.func @transform_1(%arg0: i32) -> (i32, i32) {
    %c0_i32 = arith.constant 0 : i32
    %c0_i32_0 = arith.constant 0 : i32
    return %arg0, %c0_i32 : i32, i32
  }
  func.func @transform_2(%arg0: i32) -> (i32, i32) {
    %c0_i32 = arith.constant 0 : i32
    %c0_i32_0 = arith.constant 0 : i32
    %c0_i32_1 = arith.constant 0 : i32
    return %c0_i32, %c0_i32_0 : i32, i32
  }
}

</mosaic_0001>

<bundles_post_ra>
// kernel: tpu_custom_call.1
= control target key start
LH: loop header
LB: loop body
LE: loop exit
PB: predicated region body
PF: predicated region fallthrough
CT: control target
= control target key end

     0   :  { %7 = vsyncpa [#allocation3], 0  ;;  %s268_s0 = inlined_call_operand.hbm [shape: f32[16,128], index: 0, kind: input, shape index: {}]   ;;  %s269_s1 = inlined_call_operand.hbm [shape: f32[16,128], index: 1, kind: input, shape index: {}]   ;;  %s270_s2 = inlined_call_operand.hbm [shape: f32[1,128], index: 2, kind: output, shape index: {}]  }
   0x1   :  { %8 = vsyncpa [#allocation6], 0 }
   0x2   :  { %9 = vsyncpa [#allocation4], 0  ;;  %s211_s9 = smov [#allocation2]   ;;  %s139_s13 = scalar_lea.hbm %s268_s0, 256 }
   0x3   :  { %s15_s10 = sshll.u32 %s211_s9, 4  ;;  %p140_p0 = scmp.ne.s32.totalorder %s268_s0, %s139_s13  ;;  %s16_s10 = int_to_ptr.vmem [resolvable:$true] %s15_s10 }
   0x4   :  { %p143_p1 = scmp.lt.u32.totalorder %s139_s13, %s268_s0 }
   0x6   :  { %p145_p2 = pnand %p143_p1, %p140_p0 }
   0x8   :  { %148 = shalt.err (!%p145_p2)
}
   0x9   :  { %s149_s18 = scalar_lea.vmem %s16_s10, 256  ;;  %p154_p4 = scmp.lt.s32.totalorder %s16_s10, %s16_s10 }
   0xa   :  { %p150_p3 = scmp.ne.s32.totalorder %s16_s10, %s149_s18  ;;  %p155_p5 = scmp.lt.s32.totalorder %s149_s18, %s149_s18 }
   0xc   :  { %p156_p6 = por %p155_p5, %p154_p4 }
   0xe   :  { %p157_p7 = pnand %p156_p6, %p150_p3 }
  0x10   :  { %160 = shalt.err (!%p157_p7)
}
  0x11   :  { %s212_s19 = smov 128   ;;  %s213_s20 = smov 8  }
  0x12   :  { %21 = dma.hbm_to_vmem [thread:$0]  %s268_s0, 256, %s16_s10, [#allocation3], %s212_s19, %s212_s19, %s213_s20  }
  0x13   :  { %s214_s23 = smov [#allocation5]   ;;  %s161_s27 = scalar_lea.hbm %s269_s1, 256 }
  0x14   :  { %s27_s24 = sshll.u32 %s214_s23, 4  ;;  %p162_p8 = scmp.ne.s32.totalorder %s269_s1, %s161_s27  ;;  %s28_s24 = int_to_ptr.vmem [resolvable:$true] %s27_s24 }
  0x15   :  { %p165_p9 = scmp.lt.u32.totalorder %s161_s27, %s269_s1 }
  0x17   :  { %p167_p10 = pnand %p165_p9, %p162_p8 }
  0x19   :  { %170 = shalt.err (!%p167_p10)
}
  0x1a   :  { %s171_s4 = scalar_lea.vmem %s28_s24, 256  ;;  %p176_p12 = scmp.lt.s32.totalorder %s28_s24, %s28_s24 }
  0x1b   :  { %p172_p11 = scmp.ne.s32.totalorder %s28_s24, %s171_s4  ;;  %p177_p13 = scmp.lt.s32.totalorder %s171_s4, %s171_s4 }
  0x1d   :  { %p178_p0 = por %p177_p13, %p176_p12 }
  0x1f   :  { %p179_p1 = pnand %p178_p0, %p172_p11 }
  0x21   :  { %182 = shalt.err (!%p179_p1)
}
  0x22   :  { %33 = dma.hbm_to_vmem [thread:$0]  %s269_s1, 256, %s28_s24, [#allocation6], %s212_s19, %s212_s19, %s213_s20  }
  0x23   :  { %205 = dma.done.wait [#allocation3], 256  }
  0x24   :  { %206 = vsyncadd [#allocation3], 4294967040 }
  0x25   :  { %207 = dma.done.wait [#allocation6], 256  }
  0x26   :  { %208 = vsyncadd [#allocation6], 4294967040  ;;  %v215_v0 = vmov 0.0   ;;  %v45_v1 = vld [vmem:[#allocation2] sm:$0xff]  ;;  %v46_v2 = vld [vmem:[#allocation2 + $0x8] sm:$0xff]  ;;  %s216_s1 = smov [#allocation7]  }
  0x27   :  { %44 = vst [vmem:[#allocation7] sm:$0x1] %v215_v0  ;;  %v55_v3 = vand.u32 2147483647, %v45_v1  ;;  %v56_v4 = vand.u32 2147483647, %v46_v2 }
  0x28   :  { %v47_v15 = vld [vmem:[#allocation5] sm:$0xff]  ;;  %v48_v16 = vld [vmem:[#allocation5 + $0x8] sm:$0xff]  ;;  %v49_v18 = vmax.f32 %v45_v1, 0.0  ;;  %v50_v22 = vmax.f32 %v46_v2, 0.0  ;;  %s111_s6 = sshll.u32 %s216_s1, 4  ;;  %s112_s6 = int_to_ptr.vmem [resolvable:$true] %s111_s6 }
  0x29   :  { %v57_v5 = vsub.f32 0.0, %v55_v3  ;;  %v58_v6 = vsub.f32 0.0, %v56_v4  ;;  %v51_v19 = vmul.f32 %v47_v15, %v45_v1  ;;  %v52_v23 = vmul.f32 %v48_v16, %v46_v2  ;;  %s183_s7 = scalar_lea.vmem %s112_s6, 16  ;;  %s187_s8 = scalar_lea.vmem %s112_s6, 32 }
  0x2a   :  { %p184_p2 = scmp.ne.s32.totalorder %s112_s6, %s183_s7  ;;  %p188_p3 = scmp.lt.s32.totalorder %s112_s6, %s112_s6 }
  0x2b   :  { %v59_v7 = vmul.f32 1.442695, %v57_v5  ;;  %v61_v8 = vmul.f32 1.442695, %v58_v6  ;;  %v53_v27 = vsub.f32 %v49_v18, %v51_v19  ;;  %v54_v30 = vsub.f32 %v50_v22, %v52_v23  ;;  %p189_p4 = scmp.lt.s32.totalorder %s187_s8, %s183_s7 }
  0x2d   :  { %127 = vpow2.f32 %v59_v7  ;;  %p190_p5 = por %p189_p4, %p188_p3 }
  0x2e   :  { %129 = vpow2.f32 %v61_v8  ;;  %v95_v55 = vld [vmem:[#allocation7] sm:$0x1] }
  0x2f   :  { %p191_p6 = pnand %p190_p5, %p184_p2 }
  0x37   :  { %v128_v9 = vpop.eup %127 }
  0x38   :  { %v130_v10 = vpop.eup %129  ;;  %v63_v11 = vadd.f32 1.0, %v128_v9  ;;  %v66_v13 = vmul.f32 -0.5, %v128_v9  ;;  %v69_v20 = vand.u32 2147483647, %v128_v9 }
  0x39   :  { %v72_v12 = vadd.f32 1.0, %v130_v10  ;;  %v75_v14 = vmul.f32 -0.5, %v130_v10  ;;  %v78_v24 = vand.u32 2147483647, %v130_v10 }
  0x3a   :  { %131 = vlog2.f32 %v63_v11  ;;  %v67_v17 = vadd.f32 1.0, %v66_v13  ;;  %vm70_vm0 = vcmp.lt.f32.partialorder %v69_v20, 0.0004427343 }
  0x3b   :  { %133 = vlog2.f32 %v72_v12  ;;  %v76_v21 = vadd.f32 1.0, %v75_v14  ;;  %vm79_vm1 = vcmp.lt.f32.partialorder %v78_v24, 0.0004427343 }
  0x3c   :  { %v68_v25 = vmul.f32 %v128_v9, %v67_v17 }
  0x3d   :  { %v77_v28 = vmul.f32 %v130_v10, %v76_v21 }
  0x44   :  { %v132_v26 = vpop.eup %131 }
  0x45   :  { %v134_v29 = vpop.eup %133  ;;  %v65_v31 = vmul.f32 0.6931472, %v132_v26 }
  0x46   :  { %v74_v32 = vmul.f32 0.6931472, %v134_v29 }
  0x47   :  { %v71_v33 = vsel %vm70_vm0, %v68_v25, %v65_v31 }
  0x48   :  { %v80_v34 = vsel %vm79_vm1, %v77_v28, %v74_v32  ;;  %v81_v35 = vadd.f32 %v71_v33, %v53_v27 }
  0x49   :  { %v82_v36 = vadd.f32 %v80_v34, %v54_v30 }
  0x4a   :  { %v83_v37 = vsub.f32 0.0, %v81_v35 }
  0x4b   :  { %v84_v38 = vsub.f32 0.0, %v82_v36 }
  0x4c   :  { %v85_v39 = vmul.f32 1.442695, %v83_v37 }
  0x4d   :  { %v87_v40 = vmul.f32 1.442695, %v84_v38 }
  0x4e   :  { %135 = vpow2.f32 %v85_v39 }
  0x4f   :  { %137 = vpow2.f32 %v87_v40 }
  0x58   :  { %v136_v41 = vpop.eup %135 }
  0x59   :  { %v138_v42 = vpop.eup %137  ;;  %v89_v43 = vsub.f32 1.0, %v136_v41 }
  0x5a   :  { %v90_v44 = vsub.f32 1.0, %v138_v42 }
  0x5b   :  { %v91_v45 = vmul.f32 %v89_v43, %v89_v43 }
  0x5c   :  { %v92_v46 = vmul.f32 %v90_v44, %v90_v44 }
  0x5d   :  { %v93_v47 = vmul.f32 %v91_v45, %v81_v35 }
  0x5e   :  { %v94_v48 = vmul.f32 %v92_v46, %v82_v36 }
  0x60   :  { %v96_v49 = vadd.f32 %v94_v48, %v93_v47 }
  0x62   :  { %v97_v50 = vrot.slane %v96_v49, 4 }
  0x64   :  { %v98_v51 = vadd.f32 %v97_v50, %v96_v49 }
  0x66   :  { %v99_v52 = vrot.slane %v98_v51, 2 }
  0x68   :  { %v100_v53 = vadd.f32 %v99_v52, %v98_v51 }
  0x6a   :  { %v101_v54 = vrot.slane %v100_v53, 1 }
  0x6c   :  { %v102_v56 = vadd.f32 %v101_v54, %v100_v53 }
  0x6e   :  { %v103_v57 = vadd.f32 %v102_v56, %v95_v55 }
  0x70   :  { %104 = vst [vmem:[#allocation7] sm:$0x1] %v103_v57 }
  0x71   :  { %194 = shalt.err (!%p191_p6)
}
  0x72   :  { %s195_s11 = scalar_lea.hbm %s270_s2, 16 }
  0x73   :  { %p196_p7 = scmp.ne.s32.totalorder %s270_s2, %s195_s11  ;;  %p199_p8 = scmp.lt.u32.totalorder %s195_s11, %s270_s2 }
  0x75   :  { %p201_p9 = pnand %p199_p8, %p196_p7 }
  0x77   :  { %204 = shalt.err (!%p201_p9)
}
  0x78   :  { %114 = dma.vmem_to_hbm [thread:$0]  %s112_s6, 16, %s270_s2, [#allocation4]  }
  0x79   :  { %209 = dma.done.wait [#allocation4], 16  }
  0x7a   :  { %210 = vsyncadd [#allocation4], 4294967280 }
  0x7b   :  { %118 = vsyncpa [#allocation3], 1 }
  0x7c   :  { %119 = vsyncpa [#allocation6], 1 }
  0x7d   :  { %120 = vsyncpa [#allocation4], 1 }

</bundles_post_ra>
